<compile_context>
chip_gen: v7x
topology: tpu7x:2x2x1
jax: 0.10.0
libtpu: 0.0.40
codegen_flags: <defaults>
</compile_context>

<pallas_src>
import functools

import jax
import jax.numpy as jnp
from jax.experimental import pallas as pl
from jax.experimental.pallas import tpu as pltpu

LANES = 128
SUBLANES = 8
NUM_CORE_SPLITS = 2  # megacore-friendly split (v7x has 2 TensorCores)


def _ceil_div(a: int, b: int) -> int:
    return -(-a // b)


def _round_up(a: int, b: int) -> int:
    return _ceil_div(a, b) * b


def _mape_partial_kernel(inp_ref, tgt_ref, out_ref, *,
                         tile_rows, tiles_per_core, n_elems):
    c = pl.program_id(0)   # core-split index ("parallel")
    i = pl.program_id(1)   # reduction step   ("arbitrary")

    @pl.when(i == 0)
    def _():
        out_ref[...] = jnp.zeros_like(out_ref)

    x = inp_ref[...].astype(jnp.float32)
    t = tgt_ref[...].astype(jnp.float32)

    # Global element index of every slot in this (tile_rows, 128) tile,
    # computed from the *logical* block index, so clamped / padded blocks
    # are fully masked out.
    blk = c * tiles_per_core + i
    row = jax.lax.broadcasted_iota(jnp.int32, (tile_rows, LANES), 0)
    lane = jax.lax.broadcasted_iota(jnp.int32, (tile_rows, LANES), 1)
    gidx = (blk * tile_rows + row) * LANES + lane
    mask = gidx < n_elems

    # Neutral substitution for masked slots: (1 - 1) / 1 == 0, no inf/nan.
    t_safe = jnp.where(mask, t, jnp.float32(1.0))
    x_safe = jnp.where(mask, x, jnp.float32(1.0))
    term = jnp.abs((t_safe - x_safe) / t_safe)

    # VPU-only partial reduction: fold groups of 8 rows (whole vregs) into the
    # lane-dense (8, 128) accumulator; no cross-lane XLU work in the hot loop.
    out_ref[...] += term.reshape(tile_rows // SUBLANES, SUBLANES, LANES).sum(axis=0)


def mape_loss(inp: jax.Array, tgt: jax.Array, *, tile_rows: int = 2048) -> jax.Array:
    assert inp.shape == tgt.shape, "input/target shapes must match"
    n_elems = inp.size

    # Keep the input dtype in HBM (no wrapper-side f32 upcast); the kernel
    # upcasts per-tile, which is free VPU filler under the DMA.
    inp_f = jnp.ravel(inp)
    tgt_f = jnp.ravel(tgt)

    # Only pad to a multiple of 128 lanes (tiny, usually zero); padded slots
    # are masked in-kernel so the value is irrelevant (use 1 anyway).
    rows = _ceil_div(n_elems, LANES)
    pad = rows * LANES - n_elems
    if pad:
        inp_f = jnp.concatenate([inp_f, jnp.ones((pad,), inp_f.dtype)])
        tgt_f = jnp.concatenate([tgt_f, jnp.ones((pad,), tgt_f.dtype)])

    inp2 = inp_f.reshape(rows, LANES)
    tgt2 = tgt_f.reshape(rows, LANES)

    # Effective tile: big enough to amortize per-step overhead, never larger
    # than needed for the data, multiple of 16 sublanes (valid for f32 & bf16).
    tile_rows_eff = min(_round_up(tile_rows, 16), _round_up(rows, 16))
    tiles_total = _ceil_div(rows, tile_rows_eff)
    tiles_per_core = _ceil_div(tiles_total, NUM_CORE_SPLITS)

    def in_index_map(c, i):
        # Clamp so we never request a block past the array; out-of-range
        # logical blocks are fully masked inside the kernel.
        blk = jnp.minimum(c * tiles_per_core + i, tiles_total - 1)
        return (blk, 0)

    kernel = functools.partial(
        _mape_partial_kernel,
        tile_rows=tile_rows_eff,
        tiles_per_core=tiles_per_core,
        n_elems=n_elems,
    )

    partials = pl.pallas_call(
        kernel,
        out_shape=jax.ShapeDtypeStruct((NUM_CORE_SPLITS, SUBLANES, LANES), jnp.float32),
        grid_spec=pltpu.PrefetchScalarGridSpec(
            num_scalar_prefetch=0,
            grid=(NUM_CORE_SPLITS, tiles_per_core),
            in_specs=[
                pl.BlockSpec((tile_rows_eff, LANES), in_index_map),
                pl.BlockSpec((tile_rows_eff, LANES), in_index_map),
            ],
            out_specs=pl.BlockSpec((None, SUBLANES, LANES), lambda c, i: (c, 0, 0)),
        ),
        compiler_params=pltpu.CompilerParams(
            dimension_semantics=("parallel", "arbitrary"),
        ),
    )(inp2, tgt2)

    # Final cross-lane reduce + mean (tiny, plain-JAX glue).
    return (jnp.sum(partials) / jnp.float32(n_elems)).astype(jnp.float32)


def mape_loss_ref(inp, tgt):
    return jnp.mean(jnp.abs((tgt - inp) / tgt))


if __name__ == "__main__":
    key = jax.random.PRNGKey(0)
    k1, k2 = jax.random.split(key)

    # Small shapes consistent with an elementwise loss over predictions/targets.
    shape = (2, 4, 16, 16)
    inp = jax.random.normal(k1, shape, dtype=jnp.float32)
    # Keep targets away from zero so the reference (and kernel) stay finite.
    tgt = jax.random.uniform(k2, shape, dtype=jnp.float32, minval=0.5, maxval=1.5)

    out = jax.block_until_ready(mape_loss(inp, tgt))
    ref = jax.block_until_ready(mape_loss_ref(inp, tgt))

    assert jnp.allclose(out, ref, rtol=1e-5, atol=1e-5), (out, ref)
    print("KERNEL_OK")
</pallas_src>

<mosaic_0001>
module attributes {stable_mosaic.version = 11 : i64} {
  func.func @_mape_partial_kernel(%arg0: i32, %arg1: i32, %arg2: memref<16x128xf32, #tpu.memory_space<vmem>>, %arg3: memref<16x128xf32, #tpu.memory_space<vmem>>, %arg4: memref<1x8x128xf32, #tpu.memory_space<vmem>>) attributes {dimension_semantics = [#tpu.dimension_semantics<parallel>, #tpu.dimension_semantics<arbitrary>], iteration_bounds = array<i64: 2, 1>, scalar_prefetch = 0 : i64, scratch_operands = 0 : i64, tpu.core_type = #tpu.core_type<tc>, window_params = [{transform_indices = @transform_0, window_bounds = array<i64: 16, 128>}, {transform_indices = @transform_1, window_bounds = array<i64: 16, 128>}, {transform_indices = @transform_2, window_bounds = array<i64: 1, 8, 128>}]} {
    %c0_i32 = arith.constant 0 : i32
    %0 = arith.cmpi eq, %arg1, %c0_i32 : i32
    %1 = arith.extui %0 : i1 to i32
    %c0_i32_0 = arith.constant 0 : i32
    %2 = arith.cmpi ne, %1, %c0_i32_0 : i32
    scf.if %2 {
      %cst_12 = arith.constant 0.000000e+00 : f32
      %32 = vector.broadcast %cst_12 : f32 to vector<8x128xf32>
      %c0_13 = arith.constant 0 : index
      %c0_14 = arith.constant 0 : index
      %c0_15 = arith.constant 0 : index
      %33 = vector.load %arg4[%c0_13, %c0_14, %c0_15] : memref<1x8x128xf32, #tpu.memory_space<vmem>>, vector<1x8x128xf32>
      %34 = vector.shape_cast %33 : vector<1x8x128xf32> to vector<8x128xf32>
      %35 = vector.shape_cast %32 : vector<8x128xf32> to vector<1x8x128xf32>
      tpu.vector_store %arg4[%c0_13, %c0_14, %c0_15], %35 {strides = array<i32>} : memref<1x8x128xf32, #tpu.memory_space<vmem>>, vector<1x8x128xf32>,
    } else {
    }
    %c0 = arith.constant 0 : index
    %c0_1 = arith.constant 0 : index
    %3 = vector.load %arg2[%c0, %c0_1] : memref<16x128xf32, #tpu.memory_space<vmem>>, vector<16x128xf32>
    %c0_2 = arith.constant 0 : index
    %c0_3 = arith.constant 0 : index
    %4 = vector.load %arg3[%c0_2, %c0_3] : memref<16x128xf32, #tpu.memory_space<vmem>>, vector<16x128xf32>
    %c1_i32 = arith.constant 1 : i32
    %5 = arith.muli %arg0, %c1_i32 : i32
    %6 = arith.addi %5, %arg1 : i32
    %7 = tpu.iota {dimensions = array<i32: 0>} : vector<16x128xi32>
    %8 = tpu.iota {dimensions = array<i32: 1>} : vector<16x128xi32>
    %c16_i32 = arith.constant 16 : i32
    %9 = arith.muli %6, %c16_i32 : i32
    %10 = vector.broadcast %9 : i32 to vector<16x128xi32>
    %11 = arith.addi %10, %7 : vector<16x128xi32>
    %c128_i32 = arith.constant 128 : i32
    %12 = vector.broadcast %c128_i32 : i32 to vector<16x128xi32>
    %13 = arith.muli %11, %12 : vector<16x128xi32>
    %14 = arith.addi %13, %8 : vector<16x128xi32>
    %c2048_i32 = arith.constant 2048 : i32
    %15 = vector.broadcast %c2048_i32 : i32 to vector<16x128xi32>
    %16 = arith.cmpi slt, %14, %15 : vector<16x128xi32>
    %cst = arith.constant 1.000000e+00 : f32
    %17 = vector.broadcast %cst : f32 to vector<16x128xf32>
    %18 = arith.select %16, %4, %17 : vector<16x128xi1>, vector<16x128xf32>
    %cst_4 = arith.constant 1.000000e+00 : f32
    %19 = vector.broadcast %cst_4 : f32 to vector<16x128xf32>
    %20 = arith.select %16, %3, %19 : vector<16x128xi1>, vector<16x128xf32>
    %21 = arith.subf %18, %20 : vector<16x128xf32>
    %22 = arith.divf %21, %18 : vector<16x128xf32>
    %23 = math.absf %22 : vector<16x128xf32>
    %c0_5 = arith.constant 0 : index
    %c0_6 = arith.constant 0 : index
    %c0_7 = arith.constant 0 : index
    %24 = vector.load %arg4[%c0_5, %c0_6, %c0_7] : memref<1x8x128xf32, #tpu.memory_space<vmem>>, vector<1x8x128xf32>
    %25 = vector.shape_cast %24 : vector<1x8x128xf32> to vector<8x128xf32>
    %26 = vector.shape_cast %23 : vector<16x128xf32> to vector<2x8x128xf32>
    %cst_8 = arith.constant dense<0.000000e+00> : vector<8x128xf32>
    %27 = vector.multi_reduction <add>, %26, %cst_8 [0] : vector<2x8x128xf32> to vector<8x128xf32>
    %28 = arith.addf %25, %27 : vector<8x128xf32>
    %c0_9 = arith.constant 0 : index
    %c0_10 = arith.constant 0 : index
    %c0_11 = arith.constant 0 : index
    %29 = vector.load %arg4[%c0_9, %c0_10, %c0_11] : memref<1x8x128xf32, #tpu.memory_space<vmem>>, vector<1x8x128xf32>
    %30 = vector.shape_cast %29 : vector<1x8x128xf32> to vector<8x128xf32>
    %31 = vector.shape_cast %28 : vector<8x128xf32> to vector<1x8x128xf32>
    tpu.vector_store %arg4[%c0_9, %c0_10, %c0_11], %31 {strides = array<i32>} : memref<1x8x128xf32, #tpu.memory_space<vmem>>, vector<1x8x128xf32>,
    return
  }
  func.func @transform_0(%arg0: i32, %arg1: i32) -> (i32, i32) {
    %c1_i32 = arith.constant 1 : i32
    %0 = arith.muli %arg0, %c1_i32 : i32
    %1 = arith.addi %0, %arg1 : i32
    %c0_i32 = arith.constant 0 : i32
    %2 = arith.minsi %1, %c0_i32 : i32
    %c0_i32_0 = arith.constant 0 : i32
    %c0_i32_1 = arith.constant 0 : i32
    return %2, %c0_i32_0 : i32, i32
  }
  func.func @transform_1(%arg0: i32, %arg1: i32) -> (i32, i32) {
    %c1_i32 = arith.constant 1 : i32
    %0 = arith.muli %arg0, %c1_i32 : i32
    %1 = arith.addi %0, %arg1 : i32
    %c0_i32 = arith.constant 0 : i32
    %2 = arith.minsi %1, %c0_i32 : i32
    %c0_i32_0 = arith.constant 0 : i32
    %c0_i32_1 = arith.constant 0 : i32
    return %2, %c0_i32_0 : i32, i32
  }
  func.func @transform_2(%arg0: i32, %arg1: i32) -> (i32, i32, i32) {
    %c0_i32 = arith.constant 0 : i32
    %c0_i32_0 = arith.constant 0 : i32
    %c0_i32_1 = arith.constant 0 : i32
    return %arg0, %c0_i32, %c0_i32_0 : i32, i32, i32
  }
}

</mosaic_0001>

<bundles_post_ra>
// kernel: tpu_custom_call.1
= control target key start
LH: loop header
LB: loop body
LE: loop exit
PB: predicated region body
PF: predicated region fallthrough
CT: control target
= control target key end

     0   :  { %7 = vsyncpa [#allocation3], 0  ;;  %s908_s0 = inlined_call_operand.hbm [shape: f32[16,128], index: 0, kind: input, shape index: {}]   ;;  %s909_s1 = inlined_call_operand.hbm [shape: f32[16,128], index: 1, kind: input, shape index: {}]   ;;  %s910_s2 = inlined_call_operand.hbm [shape: f32[2,8,128], index: 2, kind: output, shape index: {}]  }
   0x1   :  { %9 = vsyncpa [#allocation3 + $0x1], 0 }
   0x2   :  { %10 = vsyncpa [#allocation6], 0 }
   0x3   :  { %12 = vsyncpa [#allocation6 + $0x1], 0 }
   0x4   :  { %13 = vsyncpa [#allocation4], 0 }
   0x5   :  { %15 = vsyncpa [#allocation4 + $0x1], 0  ;;  %s704_s9 = smov 0   ;;  %s706_s10 = smov 0  }
   0x6   :  { %s708_s11 = smov 0   ;;  %s710_s12 = smov 0  }
   0x7   :  { %s712_s13 = smov 0   ;;  %s714_s14 = smov 0  }
   0x8   :  { %s716_s15 = smov 0   ;;  %s718_s16 = smov 0  }
   0x9 LB: > { %s396_s17 = sadd.s32 4294967295, %s682_s16   ;;  %s397_s18 = sadd.s32 4294967294, %s682_s16   ;;  %s682_s16 = sphi %s718_s16, %s21_s16   ;;  %s678_s15 = sphi %s716_s15, %s929_s15   ;;  %s674_s14 = sphi %s714_s14, %s928_s14   ;;  %s670_s13 = sphi %s712_s13, %s898_s13   ;;  %s666_s12 = sphi %s710_s12, %s927_s12   ;;  %s662_s11 = sphi %s708_s11, %s926_s11   ;;  %s658_s10 = sphi %s706_s10, %s925_s10   ;;  %s654_s9 = sphi %s704_s9, %s924_s9  }
   0xa   : > { %s33_s19 = sadd.s32 1, %s678_s15  ;;  %p651_p1 = scmp.ne.s32.totalorder %s670_s13, 0 }
   0xb   : > { %p35_p0 = scmp.ge.s32.totalorder %s33_s19, 2  ;;  %p54_p2 = scmp.eq.s32.totalorder %s682_s16, 0 }
   0xc   : > { %p59_p3 = scmp.ne.s32.totalorder %s670_s13, %s666_s12  ;;  %p60_p5 = scmp.eq.s32.totalorder %s396_s17, 0 }
   0xd   : > { %s931_s19 = smov (%p35_p0, %s33_s19), 0  ;;  %p750_p4 = por %p651_p1, %p54_p2 }
   0xe   : > { %p754_p6 = por %p60_p5, %p59_p3  ;;  %s101_s22 = ssub.s32 %s678_s15, %s931_s19 }
   0xf   : > { %p102_p7 = scmp.eq.s32.totalorder %s101_s22, 0  ;;  %s104_s23 = sadd.s32 1, %s662_s11 }
  0x10   : > { %s914_s21 = scalar_select %p754_p6, 1, 0 }
  0x11   : > { %s762_s24 = scalar_select %p102_p7, %s662_s11, %s104_s23  }
  0x12   : > { %p114_p8 = scmp.ne.s32.totalorder %s662_s11, %s658_s10  ;;  %p115_p9 = scmp.eq.s32.totalorder %s396_s17, 1 }
  0x13   : > { %p120_p10 = scmp.ne.s32.totalorder %s658_s10, %s654_s9  ;;  %p121_p11 = scmp.eq.s32.totalorder %s397_s18, 1 }
  0x14   : > { %p768_p12 = por %p115_p9, %p114_p8  ;;  %p434_p1 = scmp.lt.s32.totalorder %s682_s16, 2 }
  0x15   : > { %p773_p0 = por %p121_p11, %p120_p10  ;;  %s684_s27 = smov [#allocation2]  }
  0x16   : > { %s915_s25 = scalar_select %p768_p12, 1, 0 }
  0x17   : > { %s916_s26 = scalar_select %p773_p0, 1, 0 }
  0x18   : > { %s155_s28 = sshll.u32 %s684_s27, 4  ;;  %p780_p2 = pnand %p434_p1, %p750_p4  ;;  %s156_s28 = int_to_ptr.vmem [resolvable:$true] %s155_s28 }
  0x19   : > { %s515_s4 = scalar_lea.hbm %s908_s0, 256 }
  0x1a   : > { %p516_p3 = scmp.ne.s32.totalorder %s908_s0, %s515_s4  ;;  %p517_p5 = pneg %p780_p2 }
  0x1b   : > { %p522_p8 = scmp.lt.u32.totalorder %s515_s4, %s515_s4  ;;  %p524_p9 = scmp.lt.u32.totalorder %s515_s4, %s908_s0 }
  0x1c   : > { %p518_p7 = pnand %p517_p5, %p516_p3 }
  0x1d   : > { %p525_p10 = por %p524_p9, %p522_p8 }
  0x1e   : > { %p519_p4 = pneg %p518_p7 }
  0x20   : > { %p526_p11 = pnand %p525_p10, %p519_p4 }
  0x22   : > { %529 = shalt.err (!%p526_p11)
}
  0x23   : > { %s530_s12 = scalar_lea.vmem %s156_s28, 256  ;;  %s537_s17 = scalar_lea.vmem %s156_s28, 512 }
  0x24   : > { %p531_p1 = scmp.ne.s32.totalorder %s156_s28, %s530_s12  ;;  %p538_p12 = scmp.lt.s32.totalorder %s156_s28, %s156_s28 }
  0x25   : > { %p539_p6 = scmp.lt.s32.totalorder %s537_s17, %s530_s12 }
  0x26   : > { %p533_p13 = pnand %p531_p1, %p517_p5 }
  0x27   : > { %p540_p3 = por %p539_p6, %p538_p12 }
  0x28   : > { %p534_p0 = pneg %p533_p13 }
  0x2a   : > { %p541_p7 = pnand %p540_p3, %p534_p0 }
  0x2c   : > { %544 = shalt.err (!%p541_p7)
}
  0x2d   : > { %s685_s18 = smov 128   ;;  %s686_s20 = smov 8  }
  0x2e   : > { %426 = dma.hbm_to_vmem [thread:$0]  (!%p780_p2), %s908_s0, 256, %s156_s28, [#allocation3], %s685_s18, %s685_s18, %s686_s20  }
  0x2f   : > { %p406_p13 = scmp.ge.s32.totalorder %s682_s16, 1  ;;  %p187_p4 = scmp.lt.s32.totalorder %s682_s16, 3 }
  0x30   : > { %s687_s30 = smov [#allocation5]   ;;  %s545_s6 = scalar_lea.hbm %s909_s1, 256 }
  0x31   : > { %p811_p8 = pnand %p406_p13, %p187_p4  ;;  %s179_s3 = sshll.u32 %s687_s30, 4  ;;  %s180_s3 = int_to_ptr.vmem [resolvable:$true] %s179_s3 }
  0x32   : > { %p546_p6 = scmp.ne.s32.totalorder %s909_s1, %s545_s6  ;;  %p552_p9 = scmp.lt.u32.totalorder %s545_s6, %s545_s6 }
  0x33   : > { %s918_s27 = scalar_select %p811_p8, 1, 0 }
  0x34   : > { %p548_p12 = pnand %p546_p6, %p517_p5  ;;  %p554_p10 = scmp.lt.u32.totalorder %s545_s6, %s909_s1 }
  0x36   : > { %p549_p0 = pneg %p548_p12  ;;  %p555_p11 = por %p554_p10, %p552_p9 }
  0x38   : > { %p556_p1 = pnand %p555_p11, %p549_p0 }
  0x3a   : > { %559 = shalt.err (!%p556_p1)
}
  0x3b   : > { %s560_s17 = scalar_lea.vmem %s180_s3, 256  ;;  %s567_s22 = scalar_lea.vmem %s180_s3, 512 }
  0x3c   : > { %p561_p3 = scmp.ne.s32.totalorder %s180_s3, %s560_s17  ;;  %p568_p4 = scmp.lt.s32.totalorder %s180_s3, %s180_s3 }
  0x3d   : > { %p569_p8 = scmp.lt.s32.totalorder %s567_s22, %s560_s17 }
  0x3e   : > { %p563_p7 = pnand %p561_p3, %p517_p5 }
  0x3f   : > { %p570_p6 = por %p569_p8, %p568_p4 }
  0x40   : > { %p564_p13 = pneg %p563_p7 }
  0x42   : > { %p571_p12 = pnand %p570_p6, %p564_p13 }
  0x44   : > { %574 = shalt.err (!%p571_p12)
}
  0x45   : > { %429 = dma.hbm_to_vmem [thread:$0]  (!%p780_p2), %s909_s1, 256, %s180_s3, [#allocation6], %s685_s18, %s685_s18, %s686_s20  }
  0x46   : > { %p919_p0 = scmp.ne.s32.totalorder %s918_s27, 0 }
  0x47   : > { %s193_s4 = sand.u32 (!%p919_p0), 1, %s670_s13   ;;  %p920_p5 = scmp.ne.s32.totalorder (!%p919_p0), %s914_s21, 0 }
  0x48   : > { %191 = sbr.rel (%p919_p0) target bundleno = 127 (0x7f), region = 28  ;;  %s407_s5 = sshll.u32 (!%p919_p0), %s193_s4, 4 }
  0x49   : > { %s194_s6 = scalar_lea.sflag (!%p919_p0), [#allocation3], %s193_s4  ;;  %s197_s7 = scalar_lea.vmem (!%p919_p0), [#allocation2], %s407_s5 }
  0x4f   : > { %640 = dma.done.wait (%p920_p5), %s194_s6, 256  }
  0x50   : > { %642 = vsyncadd (%p920_p5), %s194_s6, 4294967040  ;;  %s203_s29 = scalar_lea.sflag [#allocation6], %s193_s4  ;;  %s206_s8 = scalar_lea.vmem [#allocation5], %s407_s5 }
  0x51   : > { %644 = dma.done.wait (%p920_p5), %s203_s29, 256  }
  0x52   : > { %646 = vsyncadd (%p920_p5), %s203_s29, 4294967040  ;;  %v250_v0 = vlaneseq  ;;  %s410_s18 = sshll.u32 %s674_s14, 4  ;;  %v247_v8 = vld [vmem:[%s206_s8] sm:$0xff]  ;;  %v248_v11 = vld [vmem:[%s206_s8 + $0x8] sm:$0xff]  ;;  %s229_s21 = sand.u32 1, %s658_s10  }
  0x53   : > { %v256_v1 = vstv %s410_s18  ;;  %v245_v14 = vld [vmem:[%s197_s7] sm:$0xff]  ;;  %v246_v16 = vld [vmem:[%s197_s7 + $0x8] sm:$0xff]  ;;  %s409_s20 = sshll.u32 %s229_s21, 3  ;;  %s412_s27 = sshll.u32 %s674_s14, 7 }
  0x54   : > { %v251_v2 = vshrl.u32 %v250_v0, 7  ;;  %v254_v4 = vand.u32 127, %v250_v0  ;;  %s231_s3 = scalar_lea.vmem [#allocation7], %s409_s20  ;;  %s855_s22 = scalar_lea.hbm %s910_s2, %s412_s27 }
  0x55   : > { %s295_s28 = sshll.u32 %s231_s3, 4  ;;  %s282_s23 = scalar_lea.sflag [#allocation4], %s229_s21  ;;  %s857_s28 = int_to_ptr.vmem [resolvable:$true] %s295_s28 }
  0x56   : > { %v252_v3 = vadd.s32 8, %v251_v2  ;;  %v257_v5 = vadd.s32 %v256_v1, %v251_v2  ;;  %s575_s30 = scalar_lea.vmem %s857_s28, 128  ;;  %p921_p8 = scmp.ne.s32.totalorder %s915_s25, 0 }
  0x57   : > { %p576_p2 = scmp.ne.s32.totalorder %s857_s28, %s575_s30  ;;  %s688_s14 = smov [#allocation7]  }
  0x58   : > { %v258_v6 = vadd.s32 %v256_v1, %v252_v3  ;;  %v259_v7 = vmul.u32 128, %v257_v5  ;;  %s579_s4 = sshll.u32 %s688_s14, 4  ;;  %s580_s4 = int_to_ptr.vmem [resolvable:$false] %s579_s4 }
  0x59   : > { %p577_p9 = pnand %p576_p2, %p921_p8  ;;  %s581_s5 = scalar_lea.vmem %s580_s4, 256 }
  0x5a   : > { %v260_v9 = vmul.u32 128, %v258_v6  ;;  %v261_v10 = vadd.s32 %v259_v7, %v254_v4  ;;  %p582_p11 = scmp.lt.s32.totalorder %s857_s28, %s580_s4  ;;  %p583_p1 = scmp.lt.s32.totalorder %s581_s5, %s575_s30 }
  0x5b   : > { %p578_p10 = pneg %p577_p9 }
  0x5c   : > { %v262_v12 = vadd.s32 %v260_v9, %v254_v4  ;;  %vm263_vm0 = vcmp.lt.s32.totalorder %v261_v10, 2048  ;;  %p584_p3 = por %p583_p1, %p582_p11 }
  0x5d   : > { %v265_v13 = vsel %vm263_vm0, %v247_v8, 1.0  ;;  %v267_v17 = vsel %vm263_vm0, %v245_v14, 1.0 }
  0x5e   : > { %vm264_vm1 = vcmp.lt.s32.totalorder %v262_v12, 2048  ;;  %511 = vrcp.f32 %v265_v13  ;;  %v269_v19 = vsub.f32 %v265_v13, %v267_v17  ;;  %p585_p7 = pnand %p584_p3, %p578_p10 }
  0x5f   : > { %v266_v15 = vsel %vm264_vm1, %v248_v11, 1.0  ;;  %v268_v18 = vsel %vm264_vm1, %v246_v16, 1.0 }
  0x60   : > { %513 = vrcp.f32 %v266_v15  ;;  %v270_v20 = vsub.f32 %v266_v15, %v268_v18 }
  0x68   : > { %v512_v21 = vpop.eup %511 }
  0x69   : > { %v272_v22 = vmul.f32 %v512_v21, %v269_v19 }
  0x6a   : > { %v514_v23 = vpop.eup %513 }
  0x6b   : > { %v274_v24 = vmul.f32 %v514_v23, %v270_v20  ;;  %v275_v25 = vand.u32 2147483647, %v272_v22 }
  0x6d   : > { %v276_v26 = vand.u32 2147483647, %v274_v24 }
  0x6f   : > { %v278_v27 = vadd.f32 %v276_v26, %v275_v25 }
  0x71   : > { %280 = vst [vmem:[%s231_s3] sm:$0xff] %v278_v27 }
  0x72   : > { %588 = shalt.err (!%p585_p7)
}
  0x73   : > { %s589_s6 = scalar_lea.hbm %s855_s22, 128  ;;  %s593_s8 = scalar_lea.hbm %s910_s2, 256 }
  0x74   : > { %p590_p13 = scmp.ne.s32.totalorder %s855_s22, %s589_s6  ;;  %p594_p12 = scmp.lt.u32.totalorder %s855_s22, %s910_s2 }
  0x75   : > { %p595_p0 = scmp.lt.u32.totalorder %s593_s8, %s589_s6  ;;  %p597_p2 = scmp.lt.u32.totalorder %s589_s6, %s855_s22 }
  0x76   : > { %p591_p4 = pnand %p590_p13, %p921_p8 }
  0x77   : > { %p596_p5 = por %p595_p0, %p594_p12 }
  0x78   : > { %p592_p6 = pneg %p591_p4 }
  0x79   : > { %p598_p9 = por %p597_p2, %p596_p5 }
  0x7b   : > { %p599_p10 = pnand %p598_p9, %p592_p6 }
  0x7d   : > { %602 = shalt.err (!%p599_p10)
}
  0x7e   : > { %421 = dma.vmem_to_hbm [thread:$0]  (%p921_p8), %s857_s28, 128, %s855_s22, %s282_s23  }
  0x7f PF: > { %s307_s20 = sand.u32 1, %s654_s9   ;;  %p922_p11 = scmp.ne.s32.totalorder %s916_s26, 0 }
  0x80   : > { %p923_p1 = scmp.ge.s32.totalorder %s682_s16, 2  ;;  %s308_s27 = scalar_lea.sflag [#allocation4], %s307_s20 }
  0x82   : > { %p431_p3 = pnand %p923_p1, %p922_p11 }
  0x84   : > { %648 = dma.done.wait (!%p431_p3), %s308_s27, 128  }
  0x85   : > { %650 = vsyncadd (!%p431_p3), %s308_s27, 4294967168  ;;  %s21_s16 = sadd.s32 1, %s682_s16   ;;  %s924_s9 = smov %s658_s10 }
  0x86   : > { %p18_p7 = scmp.ge.s32.totalorder %s21_s16, 4   ;;  %s925_s10 = smov %s662_s11 }
  0x87   : > { %s926_s11 = smov %s762_s24  ;;  %s927_s12 = smov %s670_s13 }
  0x88   : > { %s898_s13 = smov 0   ;;  %s928_s14 = smov %s678_s15 }
  0x89   : > { %s929_s15 = smov %s931_s19  ;;  %20 = sbr.rel (!%p18_p7) target bundleno = 9 (0x9), region = 90 }
  0x90   :  { %313 = vsyncpa [#allocation3], 1 }
  0x91   :  { %315 = vsyncpa [#allocation3 + $0x1], 1 }
  0x92   :  { %316 = vsyncpa [#allocation6], 1 }
  0x93   :  { %318 = vsyncpa [#allocation6 + $0x1], 1 }
  0x94   :  { %319 = vsyncpa [#allocation4], 1 }
  0x95   :  { %321 = vsyncpa [#allocation4 + $0x1], 1 }

</bundles_post_ra>
